<compile_context>
chip_gen: v6e
topology: v6e:2x2x1
jax: 0.10.0
libtpu: 0.0.40
codegen_flags: <defaults>
</compile_context>

<pallas_src>
import functools

import jax
import jax.numpy as jnp
import numpy as np
from jax.experimental import pallas as pl
from jax.experimental.pallas import tpu as pltpu

CB_PAD = 8          # Cb channels padded to one full sublane group
TARGET_TR = 2048    # target pixels (lanes) per grid step (multiple of 128)


def beta_head_kernel(patches_ref, w_ref, g_ref, pmap_ref, ohe_ref, smax_ref,
                     *, cb, inv_tau):
    # conv-as-matmul in channel-major layout:
    #   (CB_PAD, KD) bf16 @ (KD, TR) bf16 -> (CB_PAD, TR) f32 on the MXU.
    pmap = jnp.dot(w_ref[...], patches_ref[...],
                   preferred_element_type=jnp.float32)
    pmap_ref[...] = pmap

    sub = jax.lax.broadcasted_iota(jnp.int32, pmap.shape, 0)   # channel index (sublane)
    valid = sub < cb

    # softmax over the channel (sublane) axis; padded channel rows masked out.
    m = jnp.max(jnp.where(valid, pmap, -jnp.inf), axis=0, keepdims=True)
    e = jnp.where(valid, jnp.exp(pmap - m), 0.0)
    denom = jnp.sum(e, axis=0, keepdims=True)
    smax_ref[...] = e * pl.reciprocal(denom, approx=True)

    # gumbel-softmax with hard=True: forward value is exactly one_hot(argmax((pmap+g)/tau))
    # (the straight-through detach only affects gradients, not forward values).
    glog = jnp.where(valid, (pmap + g_ref[...]) * inv_tau, -jnp.inf)
    gm = jnp.max(glog, axis=0, keepdims=True)
    is_max = glog >= gm
    idx = jnp.min(jnp.where(is_max, sub, CB_PAD), axis=0, keepdims=True)  # first-max tie-break
    ohe_ref[...] = ((sub == idx) & valid).astype(jnp.float32)


def beta_head_forward(x, weight, gumbel_noise, tau=1.0):
    """x: (N, C, H, W) f32, weight: (Cb, C, 3, 3) f32 (bias=False),
    gumbel_noise: (N, Cb, H, W) f32.  Returns (pmap, ohe, smax), each (N, Cb, H, W) f32."""
    N, C, H, W = x.shape
    Cb = weight.shape[0]
    assert Cb <= CB_PAD
    rows = N * H * W
    KD = C * 9

    # im2col in channel-major (KD, rows) layout, bf16 to halve the MXU read stream.
    # Inner KD index order is c*9 + (kh*3 + kw), matching weight.reshape(Cb, C*9).
    # TODO(synk): fold the im2col into the kernel (9 shifted (C,TR) accumulated matmuls)
    # to avoid the 9x HBM expansion of x that this host-side glue materializes.
    xp = jnp.pad(x, ((0, 0), (0, 0), (1, 1), (1, 1)))
    cols = [xp[:, :, dh:dh + H, dw:dw + W] for dh in range(3) for dw in range(3)]
    patches = jnp.stack(cols, axis=0)                  # (9, N, C, H, W)
    patches = patches.transpose(2, 0, 1, 3, 4)         # (C, 9, N, H, W)
    patches_t = patches.reshape(KD, rows).astype(jnp.bfloat16)

    # weight matrix (CB_PAD, KD) bf16; padded channel rows are zero.
    wmat = weight.reshape(Cb, KD).astype(jnp.bfloat16)
    w_pad = jnp.zeros((CB_PAD, KD), jnp.bfloat16).at[:Cb, :].set(wmat)

    # gumbel noise in the same channel-major layout (CB_PAD, rows), f32 (no 128-lane padding).
    g_t = gumbel_noise.transpose(1, 0, 2, 3).reshape(Cb, rows).astype(jnp.float32)
    g_pad = jnp.zeros((CB_PAD, rows), jnp.float32).at[:Cb, :].set(g_t)

    # tile size: lane-dense (multiple of 128) blocks, as large as practical.
    rows128 = ((rows + 127) // 128) * 128
    TR = min(TARGET_TR, rows128)
    rows_p = ((rows128 + TR - 1) // TR) * TR
    if rows_p != rows:
        patches_t = jnp.pad(patches_t, ((0, 0), (0, rows_p - rows)))
        g_pad = jnp.pad(g_pad, ((0, 0), (0, rows_p - rows)))

    kern = functools.partial(beta_head_kernel, cb=Cb, inv_tau=float(1.0 / tau))
    out_shape = [jax.ShapeDtypeStruct((CB_PAD, rows_p), jnp.float32)] * 3

    pmap_f, ohe_f, smax_f = pl.pallas_call(
        kern,
        out_shape=out_shape,
        grid_spec=pltpu.PrefetchScalarGridSpec(
            num_scalar_prefetch=0,
            grid=(rows_p // TR,),
            in_specs=[
                pl.BlockSpec((KD, TR), lambda i: (0, i)),       # im2col patches^T (bf16)
                pl.BlockSpec((CB_PAD, KD), lambda i: (0, 0)),   # full (tiny) weight (bf16)
                pl.BlockSpec((CB_PAD, TR), lambda i: (0, i)),   # gumbel noise (f32)
            ],
            out_specs=[pl.BlockSpec((CB_PAD, TR), lambda i: (0, i))] * 3,
        ),
        compiler_params=pltpu.CompilerParams(
            dimension_semantics=("parallel",)),
    )(patches_t, w_pad, g_pad)

    # outputs are already channel-major: slice valid channels/pixels, reshape to NCHW.
    def to_nchw(a):
        return a[:Cb, :rows].reshape(Cb, N, H, W).transpose(1, 0, 2, 3)

    return to_nchw(pmap_f), to_nchw(ohe_f), to_nchw(smax_f)


if __name__ == "__main__":
    key = jax.random.PRNGKey(0)
    kx, kw, kg = jax.random.split(key, 3)

    N, C, H, W, Cb = 2, 4, 16, 16, 5
    x = jax.random.normal(kx, (N, C, H, W), jnp.float32)
    # deterministic synthetic conv weight (Cb, C, 3, 3), bias=False as in the module
    weight = jax.random.normal(kw, (Cb, C, 3, 3), jnp.float32) / jnp.sqrt(jnp.float32(C * 9))
    # gumbel noise ~ -log(-log(U)); uses JAX PRNG (torch RNG stream is not reproducible here)
    gumbel = jax.random.gumbel(kg, (N, Cb, H, W), jnp.float32)

    pmap, ohe, smax = jax.block_until_ready(
        jax.jit(beta_head_forward)(x, weight, gumbel))

    # sanity checks against plain-JAX conv + structural / semantic properties
    ref_pmap = jax.lax.conv_general_dilated(
        x, weight, window_strides=(1, 1), padding=((1, 1), (1, 1)),
        dimension_numbers=("NCHW", "OIHW", "NCHW"))
    assert pmap.shape == (N, Cb, H, W) and ohe.shape == pmap.shape and smax.shape == pmap.shape
    np.testing.assert_allclose(np.asarray(pmap), np.asarray(ref_pmap), atol=5e-2, rtol=5e-2)
    np.testing.assert_allclose(np.asarray(smax),
                               np.asarray(jax.nn.softmax(pmap, axis=1)),
                               atol=5e-3, rtol=5e-3)
    np.testing.assert_allclose(np.asarray(jnp.sum(smax, axis=1)), 1.0, atol=5e-3)
    np.testing.assert_allclose(np.asarray(jnp.sum(ohe, axis=1)), 1.0, atol=1e-6)
    # hard gumbel-softmax forward == one_hot(argmax((pmap + g) / tau))
    ref_idx = jnp.argmax(pmap + gumbel, axis=1)
    np.testing.assert_array_equal(np.asarray(jnp.argmax(ohe, axis=1)), np.asarray(ref_idx))

    print("KERNEL_OK")
</pallas_src>

<mosaic_0001>
module attributes {stable_mosaic.version = 11 : i64} {
  func.func @beta_head_kernel(%arg0: i32, %arg1: memref<36x512xbf16, #tpu.memory_space<vmem>>, %arg2: memref<8x36xbf16, #tpu.memory_space<vmem>>, %arg3: memref<8x512xf32, #tpu.memory_space<vmem>>, %arg4: memref<8x512xf32, #tpu.memory_space<vmem>>, %arg5: memref<8x512xf32, #tpu.memory_space<vmem>>, %arg6: memref<8x512xf32, #tpu.memory_space<vmem>>) attributes {dimension_semantics = [#tpu.dimension_semantics<parallel>], iteration_bounds = array<i64: 1>, scalar_prefetch = 0 : i64, scratch_operands = 0 : i64, tpu.core_type = #tpu.core_type<tc>, window_params = [{transform_indices = @transform_0, window_bounds = array<i64: 36, 512>}, {pipeline_mode = #tpu.pipeline_mode<synchronous>, transform_indices = @transform_1, window_bounds = array<i64: 8, 36>}, {transform_indices = @transform_2, window_bounds = array<i64: 8, 512>}, {transform_indices = @transform_3, window_bounds = array<i64: 8, 512>}, {transform_indices = @transform_4, window_bounds = array<i64: 8, 512>}, {transform_indices = @transform_5, window_bounds = array<i64: 8, 512>}]} {
    %c0 = arith.constant 0 : index
    %c0_0 = arith.constant 0 : index
    %0 = vector.load %arg2[%c0, %c0_0] : memref<8x36xbf16, #tpu.memory_space<vmem>>, vector<8x36xbf16>
    %c0_1 = arith.constant 0 : index
    %c0_2 = arith.constant 0 : index
    %1 = vector.load %arg1[%c0_1, %c0_2] : memref<36x512xbf16, #tpu.memory_space<vmem>>, vector<36x512xbf16>
    %cst = arith.constant dense<0.000000e+00> : vector<8x512xf32>
    %2 = tpu.matmul %0, %1, %cst {dimension_numbers = #tpu.dot_dimension_numbers<[1], [0], [0], [1], [0, 0, 1, 1], [], []>} : vector<8x36xbf16>, vector<36x512xbf16>, vector<8x512xf32> -> vector<8x512xf32>
    %c0_3 = arith.constant 0 : index
    %c0_4 = arith.constant 0 : index
    %3 = vector.load %arg4[%c0_3, %c0_4] : memref<8x512xf32, #tpu.memory_space<vmem>>, vector<8x512xf32>
    tpu.vector_store %arg4[%c0_3, %c0_4], %2 {strides = array<i32>} : memref<8x512xf32, #tpu.memory_space<vmem>>, vector<8x512xf32>,
    %4 = tpu.iota {dimensions = array<i32: 0>} : vector<8x512xi32>
    %c5_i32 = arith.constant 5 : i32
    %5 = vector.broadcast %c5_i32 : i32 to vector<8x512xi32>
    %6 = arith.cmpi slt, %4, %5 : vector<8x512xi32>
    %cst_5 = arith.constant 0xFF800000 : f32
    %7 = vector.broadcast %cst_5 : f32 to vector<8x512xf32>
    %8 = arith.select %6, %2, %7 : vector<8x512xi1>, vector<8x512xf32>
    %cst_6 = arith.constant dense<0xFF800000> : vector<512xf32>
    %9 = vector.multi_reduction <maximumf>, %8, %cst_6 [0] : vector<8x512xf32> to vector<512xf32>
    %10 = vector.shape_cast %9 : vector<512xf32> to vector<1x512xf32>
    %11 = vector.broadcast %10 : vector<1x512xf32> to vector<8x512xf32>
    %12 = arith.subf %2, %11 : vector<8x512xf32>
    %13 = math.exp %12 : vector<8x512xf32>
    %cst_7 = arith.constant 0.000000e+00 : f32
    %14 = vector.broadcast %cst_7 : f32 to vector<8x512xf32>
    %15 = arith.select %6, %13, %14 : vector<8x512xi1>, vector<8x512xf32>
    %cst_8 = arith.constant dense<0.000000e+00> : vector<512xf32>
    %16 = vector.multi_reduction <add>, %15, %cst_8 [0] : vector<8x512xf32> to vector<512xf32>
    %17 = vector.shape_cast %16 : vector<512xf32> to vector<1x512xf32>
    %18 = tpu.reciprocal %17 {approx = true} : vector<1x512xf32> -> vector<1x512xf32>
    %19 = vector.broadcast %18 : vector<1x512xf32> to vector<8x512xf32>
    %20 = arith.mulf %15, %19 : vector<8x512xf32>
    %c0_9 = arith.constant 0 : index
    %c0_10 = arith.constant 0 : index
    %21 = vector.load %arg6[%c0_9, %c0_10] : memref<8x512xf32, #tpu.memory_space<vmem>>, vector<8x512xf32>
    tpu.vector_store %arg6[%c0_9, %c0_10], %20 {strides = array<i32>} : memref<8x512xf32, #tpu.memory_space<vmem>>, vector<8x512xf32>,
    %c0_11 = arith.constant 0 : index
    %c0_12 = arith.constant 0 : index
    %22 = vector.load %arg3[%c0_11, %c0_12] : memref<8x512xf32, #tpu.memory_space<vmem>>, vector<8x512xf32>
    %23 = arith.addf %2, %22 : vector<8x512xf32>
    %cst_13 = arith.constant 1.000000e+00 : f32
    %24 = vector.broadcast %cst_13 : f32 to vector<8x512xf32>
    %25 = arith.mulf %23, %24 : vector<8x512xf32>
    %cst_14 = arith.constant 0xFF800000 : f32
    %26 = vector.broadcast %cst_14 : f32 to vector<8x512xf32>
    %27 = arith.select %6, %25, %26 : vector<8x512xi1>, vector<8x512xf32>
    %cst_15 = arith.constant dense<0xFF800000> : vector<512xf32>
    %28 = vector.multi_reduction <maximumf>, %27, %cst_15 [0] : vector<8x512xf32> to vector<512xf32>
    %29 = vector.shape_cast %28 : vector<512xf32> to vector<1x512xf32>
    %30 = vector.broadcast %29 : vector<1x512xf32> to vector<8x512xf32>
    %31 = arith.cmpf oge, %27, %30 : vector<8x512xf32>
    %c8_i32 = arith.constant 8 : i32
    %32 = vector.broadcast %c8_i32 : i32 to vector<8x512xi32>
    %33 = arith.select %31, %4, %32 : vector<8x512xi1>, vector<8x512xi32>
    %cst_16 = arith.constant dense<2147483647> : vector<512xi32>
    %34 = vector.multi_reduction <minsi>, %33, %cst_16 [0] : vector<8x512xi32> to vector<512xi32>
    %35 = vector.shape_cast %34 : vector<512xi32> to vector<1x512xi32>
    %36 = vector.broadcast %35 : vector<1x512xi32> to vector<8x512xi32>
    %37 = arith.cmpi eq, %4, %36 : vector<8x512xi32>
    %38 = arith.andi %37, %6 : vector<8x512xi1>
    %39 = arith.extui %38 : vector<8x512xi1> to vector<8x512xi32>
    %40 = arith.sitofp %39 : vector<8x512xi32> to vector<8x512xf32>
    %c0_17 = arith.constant 0 : index
    %c0_18 = arith.constant 0 : index
    %41 = vector.load %arg5[%c0_17, %c0_18] : memref<8x512xf32, #tpu.memory_space<vmem>>, vector<8x512xf32>
    tpu.vector_store %arg5[%c0_17, %c0_18], %40 {strides = array<i32>} : memref<8x512xf32, #tpu.memory_space<vmem>>, vector<8x512xf32>,
    return
  }
  func.func @transform_0(%arg0: i32) -> (i32, i32) {
    %c0_i32 = arith.constant 0 : i32
    %c0_i32_0 = arith.constant 0 : i32
    return %c0_i32, %arg0 : i32, i32
  }
  func.func @transform_1(%arg0: i32) -> (i32, i32) {
    %c0_i32 = arith.constant 0 : i32
    %c0_i32_0 = arith.constant 0 : i32
    %c0_i32_1 = arith.constant 0 : i32
    return %c0_i32, %c0_i32_0 : i32, i32
  }
  func.func @transform_2(%arg0: i32) -> (i32, i32) {
    %c0_i32 = arith.constant 0 : i32
    %c0_i32_0 = arith.constant 0 : i32
    return %c0_i32, %arg0 : i32, i32
  }
  func.func @transform_3(%arg0: i32) -> (i32, i32) {
    %c0_i32 = arith.constant 0 : i32
    %c0_i32_0 = arith.constant 0 : i32
    return %c0_i32, %arg0 : i32, i32
  }
  func.func @transform_4(%arg0: i32) -> (i32, i32) {
    %c0_i32 = arith.constant 0 : i32
    %c0_i32_0 = arith.constant 0 : i32
    return %c0_i32, %arg0 : i32, i32
  }
  func.func @transform_5(%arg0: i32) -> (i32, i32) {
    %c0_i32 = arith.constant 0 : i32
    %c0_i32_0 = arith.constant 0 : i32
    return %c0_i32, %arg0 : i32, i32
  }
}

</mosaic_0001>

<bundles_post_ra>
// kernel: beta_head_forward.1
= control target key start
LH: loop header
LB: loop body
LE: loop exit
PB: predicated region body
PF: predicated region fallthrough
CT: control target
= control target key end

     0   :  { %vm83_vm0 = vcmask 1041408   ;;  %v431_v2 = vmov 0   ;;  %vm79_vm1 = vcmask 293888   ;;  %v182_v18 = vlaneseq  ;;  %s631_s0 = inlined_call_operand.vmem [shape: bf16[36,512], index: 0, kind: input, shape index: {}]   ;;  %s632_s1 = inlined_call_operand.vmem [shape: bf16[8,36], index: 1, kind: input, shape index: {}]   ;;  %s633_s2 = inlined_call_operand.vmem [shape: f32[8,512], index: 2, kind: input, shape index: {}]   ;;  %s634_s3 = inlined_call_operand.vmem [shape: f32[8,512], index: 3, kind: output, shape index: {0}]   ;;  %s635_s4 = inlined_call_operand.vmem [shape: f32[8,512], index: 4, kind: output, shape index: {1}]   ;;  %s636_s5 = inlined_call_operand.vmem [shape: f32[8,512], index: 5, kind: output, shape index: {2}]  }
   0x1   :  { %v27_v0 = vld [vmem:[%s631_s0 + $0x40] sm:$0x33]  ;;  %v28_v1 = vld [vmem:[%s631_s0 + $0x48] sm:$0x33]  ;;  %128 = vmatprep.mubr.bf16.mxu0 %v431_v2  ;;  %169 = vmatprep.mubr.bf16.mxu1 %v431_v2  ;;  %v267_v21 = vld [vmem:[%s633_s2 + $0x10] sm:$0xff] }
   0x2   :  { %v386_v3 = vcombine.high %v27_v0, %v27_v0  ;;  %v388_v4 = vcombine.high %v28_v1, %v28_v1  ;;  %v385_v5 = vcombine.low %v27_v0, %v27_v0  ;;  %v387_v6 = vcombine.low %v28_v1, %v28_v1  ;;  %v403_v7 = vld [vmem:[%s631_s0 + $0x24] ss:$16 sps:$4 sm:$0xff]   ;;  %v405_v8 = vld [vmem:[%s631_s0 + $0x2c] ss:$16 sps:$4 sm:$0xff]   ;;  %v407_v11 = vld [vmem:[%s631_s0 + $0x20] ss:$16 sps:$4 sm:$0xff]  }
   0x3   :  { %v408_v12 = vld [vmem:[%s631_s0 + $0x28] ss:$16 sps:$4 sm:$0xff]   ;;  %v409_v13 = vld [vmem:[%s631_s0 + $0x4] ss:$16 sps:$4 sm:$0xff]   ;;  %v411_v14 = vld [vmem:[%s631_s0 + $0xc] ss:$16 sps:$4 sm:$0xff]  }
   0x4   :  { %389 = vmatprep.subr.msk.bf16.mxu0 %vm83_vm0, %v386_v3  ;;  %391 = vmatprep.subr.msk.bf16.mxu1 %vm83_vm0, %v388_v4  ;;  %v85_v9 = vsel %vm83_vm0, %v385_v5, 0  ;;  %v91_v10 = vsel %vm83_vm0, %v387_v6, 0  ;;  %v413_v15 = vld [vmem:[%s631_s0] ss:$16 sps:$4 sm:$0xff]   ;;  %v414_v16 = vld [vmem:[%s631_s0 + $0x8] ss:$16 sps:$4 sm:$0xff]  }
   0x5   :  { %107 = vmatpush1.bf16.msra.mxu0 %v85_v9  ;;  %148 = vmatpush1.bf16.msra.mxu1 %v91_v10  ;;  %v18_v17 = vld [vmem:[%s632_s1] sm:$0xf]  ;;  %v496_v19 = vshrl.u32 %v182_v18, 7  ;;  %v266_v24 = vld [vmem:[%s633_s2 + $0x8] sm:$0xff]  ;;  %v268_v33 = vld [vmem:[%s633_s2 + $0x18] sm:$0xff] }
   0x6   :  { %108 = vmatprep.subr.bf16.mxu0 %v403_v7  ;;  %149 = vmatprep.subr.bf16.mxu1 %v405_v8  ;;  %v265_v20 = vld [vmem:[%s633_s2] sm:$0xff] }
   0x7   :  { %vm184_vm2 = vcmp.lt.s32.totalorder %v496_v19, 5 }
   0x9   :  { %109 = vmatpush1.bf16.msra.mxu0 %v407_v11  ;;  %150 = vmatpush1.bf16.msra.mxu1 %v408_v12 }
   0xa   :  { %110 = vmatprep.subr.bf16.mxu0 %v409_v13  ;;  %151 = vmatprep.subr.bf16.mxu1 %v411_v14 }
   0xd   :  { %111 = vmatpush1.bf16.msra.mxu0 %v413_v15  ;;  %152 = vmatpush1.bf16.msra.mxu1 %v414_v16 }
  0x10   :  { %390 = vmatmul.mubr.msk.bf16.vlgmr.msra.gmra.mxu0 %vm79_vm1, %v18_v17  ;;  %392 = vmatmul.mubr.msk.bf16.vlgmr.msra.gmra.mxu1 %vm79_vm1, %v18_v17 }
  0xd0   :  { %v505_v22 = vpop.f32.mrf.mxu0  ;;  %v507_v23 = vpop.f32.mrf.mxu1 }
  0xd1   :  { %178 = vst [vmem:[%s634_s3] sm:$0xff] %v505_v22  ;;  %v185_v25 = vsel %vm184_vm2, %v505_v22, -inf  ;;  %v269_v26 = vadd.f32 %v265_v20, %v505_v22  ;;  %180 = vst [vmem:[%s634_s3 + $0x10] sm:$0xff] %v507_v23  ;;  %v187_v27 = vsel %vm184_vm2, %v507_v23, -inf  ;;  %v271_v28 = vadd.f32 %v267_v21, %v507_v23 }
  0xd2   :  { %v189_v29 = vrot.slane %v185_v25, 4  ;;  %v201_v30 = vrot.slane %v187_v27, 4  ;;  %v528_v31 = vpop.f32.mrf.mxu0  ;;  %v530_v32 = vpop.f32.mrf.mxu1 }
  0xd3   :  { %v537_v34 = vsel %vm184_vm2, %v269_v26, -inf  ;;  %v541_v35 = vsel %vm184_vm2, %v271_v28, -inf  ;;  %179 = vst [vmem:[%s634_s3 + $0x8] sm:$0xff] %v528_v31  ;;  %v186_v36 = vsel %vm184_vm2, %v528_v31, -inf  ;;  %v270_v37 = vadd.f32 %v266_v24, %v528_v31  ;;  %181 = vst [vmem:[%s634_s3 + $0x18] sm:$0xff] %v530_v32 }
  0xd4   :  { %v190_v38 = vmax.f32 %v185_v25, %v189_v29  ;;  %v277_v39 = vrot.slane %v537_v34, 4  ;;  %v202_v40 = vmax.f32 %v187_v27, %v201_v30  ;;  %v289_v41 = vrot.slane %v541_v35, 4  ;;  %v134_v42 = vpop.f32.mrf.mxu0  ;;  %v175_v43 = vpop.f32.mrf.mxu1 }
  0xd5   :  { %v195_v44 = vrot.slane %v186_v36, 4  ;;  %v559_v45 = vsel %vm184_vm2, %v270_v37, -inf  ;;  %v188_v46 = vsel %vm184_vm2, %v530_v32, -inf  ;;  %v272_v47 = vadd.f32 %v268_v33, %v530_v32 }
  0xd6   :  { %v191_v48 = vrot.slane %v190_v38, 2  ;;  %v278_v49 = vmax.f32 %v537_v34, %v277_v39  ;;  %v203_v50 = vrot.slane %v202_v40, 2  ;;  %v290_v51 = vmax.f32 %v541_v35, %v289_v41  ;;  %v135_v52 = vpop.f32.mrf.mxu0  ;;  %v176_v53 = vpop.f32.mrf.mxu1 }
  0xd7   :  { %v196_v54 = vmax.f32 %v186_v36, %v195_v44  ;;  %v283_v55 = vrot.slane %v559_v45, 4  ;;  %v207_v56 = vrot.slane %v188_v46, 4  ;;  %v570_v57 = vsel %vm184_vm2, %v272_v47, -inf }
  0xd8   :  { %v192_v58 = vmax.f32 %v190_v38, %v191_v48  ;;  %v279_v59 = vrot.slane %v278_v49, 2  ;;  %v204_v60 = vmax.f32 %v202_v40, %v203_v50  ;;  %v291_v61 = vrot.slane %v290_v51, 2 }
  0xd9   :  { %v197_v62 = vrot.slane %v196_v54, 2  ;;  %v284_v63 = vmax.f32 %v559_v45, %v283_v55  ;;  %v208_v0 = vmax.f32 %v188_v46, %v207_v56  ;;  %v295_v1 = vrot.slane %v570_v57, 4 }
  0xda   :  { %v193_v2 = vrot.slane %v192_v58, 1  ;;  %v280_v3 = vmax.f32 %v278_v49, %v279_v59  ;;  %v205_v4 = vrot.slane %v204_v60, 1  ;;  %v292_v5 = vmax.f32 %v290_v51, %v291_v61 }
  0xdb   :  { %v198_v6 = vmax.f32 %v196_v54, %v197_v62  ;;  %v285_v7 = vrot.slane %v284_v63, 2  ;;  %v209_v8 = vrot.slane %v208_v0, 2  ;;  %v296_v9 = vmax.f32 %v570_v57, %v295_v1 }
  0xdc   :  { %v194_v10 = vmax.f32 %v192_v58, %v193_v2  ;;  %v281_v11 = vrot.slane %v280_v3, 1  ;;  %v206_v12 = vmax.f32 %v204_v60, %v205_v4  ;;  %v293_v13 = vrot.slane %v292_v5, 1 }
  0xdd   :  { %v199_v14 = vrot.slane %v198_v6, 1  ;;  %v286_v15 = vmax.f32 %v284_v63, %v285_v7  ;;  %v210_v16 = vmax.f32 %v208_v0, %v209_v8  ;;  %v297_v17 = vrot.slane %v296_v9, 2 }
  0xde   :  { %v213_v18 = vsub.f32 %v505_v22, %v194_v10  ;;  %v282_v20 = vmax.f32 %v280_v3, %v281_v11  ;;  %v215_v21 = vsub.f32 %v507_v23, %v206_v12  ;;  %v294_v24 = vmax.f32 %v292_v5, %v293_v13 }
  0xdf   :  { %v200_v25 = vmax.f32 %v198_v6, %v199_v14  ;;  %v287_v26 = vrot.slane %v286_v15, 1  ;;  %v211_v27 = vrot.slane %v210_v16, 1  ;;  %v298_v28 = vmax.f32 %v296_v9, %v297_v17 }
  0xe0   :  { %v217_v29 = vmul.f32 1.442695, %v213_v18  ;;  %vm301_vm3 = vcmp.ge.f32.partialorder %v537_v34, %v282_v20  ;;  %v221_v30 = vmul.f32 1.442695, %v215_v21  ;;  %vm303_vm4 = vcmp.ge.f32.partialorder %v541_v35, %v294_v24 }
  0xe1   :  { %v305_v33 = vsel %vm301_vm3, %v496_v19, 8  ;;  %v307_v36 = vsel %vm303_vm4, %v496_v19, 8  ;;  %v214_v22 = vsub.f32 %v528_v31, %v200_v25  ;;  %v288_v37 = vmax.f32 %v286_v15, %v287_v26 }
  0xe2   :  { %415 = vpow2.f32 %v217_v29  ;;  %v309_v23 = vrot.slane %v305_v33, 4  ;;  %v327_v38 = vrot.slane %v307_v36, 4  ;;  %v212_v39 = vmax.f32 %v210_v16, %v211_v27 }
  0xe3   :  { %417 = vpow2.f32 %v221_v30  ;;  %v219_v40 = vmul.f32 1.442695, %v214_v22  ;;  %vm302_vm5 = vcmp.ge.f32.partialorder %v559_v45, %v288_v37  ;;  %v299_v41 = vrot.slane %v298_v28, 1 }
  0xe4   :  { %vm310_vm6 = vcmp.lt.s32.totalorder %v305_v33, %v309_v23  ;;  %vm328_vm7 = vcmp.lt.s32.totalorder %v307_v36, %v327_v38  ;;  %v306_v34 = vsel %vm302_vm5, %v496_v19, 8  ;;  %v216_v35 = vsub.f32 %v530_v32, %v212_v39 }
  0xe5   :  { %v311_v42 = vsel %vm310_vm6, %v305_v33, %v309_v23  ;;  %v329_v43 = vsel %vm328_vm7, %v307_v36, %v327_v38  ;;  %419 = vpow2.f32 %v219_v40  ;;  %v318_v31 = vrot.slane %v306_v34, 4 }
  0xe6   :  { %v312_v44 = vrot.slane %v311_v42, 2  ;;  %v330_v46 = vrot.slane %v329_v43, 2  ;;  %v223_v47 = vmul.f32 1.442695, %v216_v35  ;;  %v300_v48 = vmax.f32 %v298_v28, %v299_v41 }
  0xe7   :  { %vm319_vm8 = vcmp.lt.s32.totalorder %v306_v34, %v318_v31  ;;  %v432_v0 = vmov 0.0  }
  0xe8   :  { %vm313_vm9 = vcmp.lt.s32.totalorder %v311_v42, %v312_v44  ;;  %vm331_vm10 = vcmp.lt.s32.totalorder %v329_v43, %v330_v46  ;;  %v320_v49 = vsel %vm319_vm8, %v306_v34, %v318_v31  ;;  %421 = vpow2.f32 %v223_v47 }
  0xe9   :  { %v314_v45 = vsel %vm313_vm9, %v311_v42, %v312_v44  ;;  %v332_v50 = vsel %vm331_vm10, %v329_v43, %v330_v46  ;;  %v321_v51 = vrot.slane %v320_v49, 2  ;;  %vm304_vm11 = vcmp.ge.f32.partialorder %v570_v57, %v300_v48 }
  0xea   :  { %v315_v52 = vrot.slane %v314_v45, 1  ;;  %v333_v32 = vrot.slane %v332_v50, 1  ;;  %v308_v53 = vsel %vm304_vm11, %v496_v19, 8 }
  0xeb   :  { %vm322_vm12 = vcmp.lt.s32.totalorder %v320_v49, %v321_v51  ;;  %v336_v54 = vrot.slane %v308_v53, 4 }
  0xec   :  { %vm316_vm13 = vcmp.lt.s32.totalorder %v314_v45, %v315_v52  ;;  %vm334_vm14 = vcmp.lt.s32.totalorder %v332_v50, %v333_v32  ;;  %v323_v55 = vsel %vm322_vm12, %v320_v49, %v321_v51 }
  0xed   :  { %v317_v56 = vsel %vm316_vm13, %v314_v45, %v315_v52  ;;  %v335_v58 = vsel %vm334_vm14, %v332_v50, %v333_v32  ;;  %v324_v59 = vrot.slane %v323_v55, 1  ;;  %vm337_vm15 = vcmp.lt.s32.totalorder %v308_v53, %v336_v54 }
  0xee   :  { %vm345_vm0 = vcmp.eq.s32.totalorder %v496_v19, %v317_v56  ;;  %vm347_vm1 = vcmp.eq.s32.totalorder %v496_v19, %v335_v58  ;;  %v338_v60 = vsel %vm337_vm15, %v308_v53, %v336_v54 }
  0xef   :  { %v416_v61 = vpop.eup %415  ;;  %vm349_vm3 = vmand %vm345_vm0, %vm184_vm2  ;;  %vm325_vm4 = vcmp.lt.s32.totalorder %v323_v55, %v324_v59  ;;  %v339_v57 = vrot.slane %v338_v60, 2 }
  0xf0   :  { %v418_v62 = vpop.eup %417  ;;  %v225_v63 = vsel %vm184_vm2, %v416_v61, 0.0  ;;  %v393_v1 = vsel %vm349_vm3, 1.0, %v432_v0  ;;  %vm351_vm5 = vmand %vm347_vm1, %vm184_vm2  ;;  %v326_v2 = vsel %vm325_vm4, %v323_v55, %v324_v59 }
  0xf1   :  { %v229_v3 = vrot.slane %v225_v63, 4  ;;  %361 = vst [vmem:[%s635_s4] sm:$0xff] %v393_v1  ;;  %v227_v4 = vsel %vm184_vm2, %v418_v62, 0.0  ;;  %v395_v5 = vsel %vm351_vm5, 1.0, %v432_v0  ;;  %vm346_vm6 = vcmp.eq.s32.totalorder %v496_v19, %v326_v2 }
  0xf2   :  { %v420_v6 = vpop.eup %419  ;;  %v241_v7 = vrot.slane %v227_v4, 4  ;;  %363 = vst [vmem:[%s635_s4 + $0x10] sm:$0xff] %v395_v5  ;;  %vm350_vm7 = vmand %vm346_vm6, %vm184_vm2  ;;  %vm340_vm8 = vcmp.lt.s32.totalorder %v338_v60, %v339_v57 }
  0xf3   :  { %v230_v8 = vadd.f32 %v229_v3, %v225_v63  ;;  %v226_v9 = vsel %vm184_vm2, %v420_v6, 0.0  ;;  %v394_v10 = vsel %vm350_vm7, 1.0, %v432_v0  ;;  %v341_v11 = vsel %vm340_vm8, %v338_v60, %v339_v57 }
  0xf4   :  { %v242_v12 = vadd.f32 %v241_v7, %v227_v4  ;;  %v235_v13 = vrot.slane %v226_v9, 4  ;;  %362 = vst [vmem:[%s635_s4 + $0x8] sm:$0xff] %v394_v10  ;;  %v342_v14 = vrot.slane %v341_v11, 1 }
  0xf5   :  { %v422_v15 = vpop.eup %421  ;;  %v231_v16 = vrot.slane %v230_v8, 2 }
  0xf6   :  { %v243_v17 = vrot.slane %v242_v12, 2  ;;  %v236_v18 = vadd.f32 %v235_v13, %v226_v9  ;;  %v228_v20 = vsel %vm184_vm2, %v422_v15, 0.0  ;;  %vm343_vm9 = vcmp.lt.s32.totalorder %v341_v11, %v342_v14 }
  0xf7   :  { %v232_v21 = vadd.f32 %v231_v16, %v230_v8  ;;  %v247_v24 = vrot.slane %v228_v20, 4  ;;  %v344_v25 = vsel %vm343_vm9, %v341_v11, %v342_v14 }
  0xf8   :  { %v244_v26 = vadd.f32 %v243_v17, %v242_v12  ;;  %v237_v27 = vrot.slane %v236_v18, 2  ;;  %vm348_vm10 = vcmp.eq.s32.totalorder %v496_v19, %v344_v25 }
  0xf9   :  { %v233_v28 = vrot.slane %v232_v21, 1  ;;  %v248_v29 = vadd.f32 %v247_v24, %v228_v20  ;;  %vm352_vm11 = vmand %vm348_vm10, %vm184_vm2 }
  0xfa   :  { %v245_v30 = vrot.slane %v244_v26, 1  ;;  %v238_v33 = vadd.f32 %v237_v27, %v236_v18  ;;  %v396_v36 = vsel %vm352_vm11, 1.0, %v432_v0 }
  0xfb   :  { %v234_v22 = vadd.f32 %v233_v28, %v232_v21  ;;  %v249_v37 = vrot.slane %v248_v29, 2  ;;  %364 = vst [vmem:[%s635_s4 + $0x18] sm:$0xff] %v396_v36 }
  0xfc   :  { %v246_v23 = vadd.f32 %v245_v30, %v244_v26  ;;  %v239_v38 = vrot.slane %v238_v33, 1 }
  0xfd   :  { %423 = vrcp.f32 %v234_v22  ;;  %v250_v39 = vadd.f32 %v249_v37, %v248_v29 }
  0xfe   :  { %425 = vrcp.f32 %v246_v23  ;;  %v240_v40 = vadd.f32 %v239_v38, %v238_v33 }
  0xff   :  { %v251_v41 = vrot.slane %v250_v39, 1 }
 0x100   :  { %427 = vrcp.f32 %v240_v40 }
 0x101   :  { %v252_v34 = vadd.f32 %v251_v41, %v250_v39 }
 0x103   :  { %429 = vrcp.f32 %v252_v34 }
 0x10a   :  { %v424_v19 = vpop.eup %423 }
 0x10b   :  { %v426_v35 = vpop.eup %425  ;;  %v257_v42 = vmul.f32 %v424_v19, %v225_v63 }
 0x10c   :  { %v259_v43 = vmul.f32 %v426_v35, %v227_v4 }
 0x10d   :  { %v428_v31 = vpop.eup %427  ;;  %261 = vst [vmem:[%s636_s5] sm:$0xff] %v257_v42 }
 0x10e   :  { %263 = vst [vmem:[%s636_s5 + $0x10] sm:$0xff] %v259_v43  ;;  %v258_v44 = vmul.f32 %v428_v31, %v226_v9 }
 0x110   :  { %v430_v46 = vpop.eup %429  ;;  %262 = vst [vmem:[%s636_s5 + $0x8] sm:$0xff] %v258_v44 }
 0x111   :  { %v260_v47 = vmul.f32 %v430_v46, %v228_v20 }
 0x113   :  { %264 = vst [vmem:[%s636_s5 + $0x18] sm:$0xff] %v260_v47 }

</bundles_post_ra>
